<compile_context>
chip_gen: v5e
topology: v5e:2x2
jax: 0.10.0
libtpu: 0.0.40
codegen_flags: <defaults>
</compile_context>

<pallas_src>
import functools

import jax
import jax.numpy as jnp
from jax.experimental import pallas as pl
from jax.experimental.pallas import tpu as pltpu

NUM_FGS = 4
CA = 420.0


def _bbl_kernel(gs0_ref, a1_ref, invd0_ref, fg_ref, a_ref, gam_ref, vpd_ref,
                out_ref, *, num_fgs):
    # One-time convert to 32-bit layout: keeps every `fg == f` compare and the
    # selects in a single vreg layout instead of re-paying int8 unpack per group.
    fg = fg_ref[...].astype(jnp.int32)     # (BM, 128) group index
    an = a_ref[...]                        # (BM, 128) f32 assimilation rate
    gam = gam_ref[...]                     # (BM, 128) f32 CO2 compensation point
    vpd = vpd_ref[...]                     # (BM, 128) f32 vapor pressure deficit

    # Gather gs0[FGs], a1[FGs], (1/D0)[FGs] via static compare/select over the
    # small number of groups, seeded with group 0.
    # NOTE: out-of-range FGs values silently fall back to group 0 (PyTorch would
    # raise on an out-of-range index).
    gs0_sel = jnp.full(fg.shape, gs0_ref[0], jnp.float32)
    a1_sel = jnp.full(fg.shape, a1_ref[0], jnp.float32)
    invd0_sel = jnp.full(fg.shape, invd0_ref[0], jnp.float32)
    for f in range(1, num_fgs):
        m = fg == f
        gs0_sel = jnp.where(m, gs0_ref[f], gs0_sel)
        a1_sel = jnp.where(m, a1_ref[f], a1_sel)
        invd0_sel = jnp.where(m, invd0_ref[f], invd0_sel)

    # Single per-element divide: combine the two denominators.
    denom = (CA - gam) * (1.0 + vpd * invd0_sel)
    out_ref[...] = gs0_sel + a1_sel * an / denom


def _choose_block_rows(rows, requested):
    """Clamp the tile to the array, keep int8 (32,128) alignment on partial tiles,
    and keep >= 2 grid steps where possible so v7x can use both TensorCores."""
    block_rows = min(requested, rows)
    if block_rows == rows and rows >= 64 and rows % 32 == 0:
        # Split roughly in half (rounded up to a 32-row boundary) -> grid of 2.
        block_rows = ((rows + 1) // 2 + 31) // 32 * 32
    if block_rows < rows:
        # int8 FGs tile needs (32,128) alignment; f32 tiles then satisfy (8,128).
        assert block_rows % 32 == 0, "block_rows must be a multiple of 32"
    return block_rows


def bbl_forward(gs0, a1, d0, fgs, an, gamma, vpd, *, block_rows=2048):
    """gs0, a1, d0: (num_FGs,) f32; fgs: (rows,128) int; an, gamma, vpd: (rows,128) f32
    -> (rows,128) f32 stomatal conductance.

    Sweep block_rows in 2048-4096 for large inputs (vmem_limit_bytes is derived
    from the tile, so larger tiles do not hit per-generation scoped-VMEM defaults)."""
    rows, lanes = an.shape
    assert lanes == 128
    num_fgs = gs0.shape[0]
    # Guard the int8 group-index encoding (would silently wrap for >=128 groups).
    assert num_fgs <= 127, "int8 FGs encoding supports at most 127 groups"

    block_rows = _choose_block_rows(rows, block_rows)
    grid = (pl.cdiv(rows, block_rows),)

    # Host-side prep (tiny, per-group ops — not per-element prescaling):
    fgs_i8 = fgs.astype(jnp.int8)
    inv_d0 = (1.0 / d0).astype(jnp.float32)

    # Explicit scoped-VMEM budget: 2 buffers x (4 f32 + 1 i8 tile) + 25% headroom,
    # with a floor so tiny demo tiles still leave room for internal scratch.
    bytes_per_step = block_rows * lanes * (4 * 4 + 1)
    vmem_limit = max(int(2 * bytes_per_step * 1.25), 4 * 1024 * 1024)

    tile_f32 = pl.BlockSpec((block_rows, lanes), lambda i: (i, 0))
    tile_i8 = pl.BlockSpec((block_rows, lanes), lambda i: (i, 0))
    smem_spec = pl.BlockSpec(memory_space=pltpu.MemorySpace.SMEM)

    return pl.pallas_call(
        functools.partial(_bbl_kernel, num_fgs=num_fgs),
        out_shape=jax.ShapeDtypeStruct((rows, lanes), jnp.float32),
        grid_spec=pl.GridSpec(
            grid=grid,
            in_specs=[smem_spec, smem_spec, smem_spec,
                      tile_i8, tile_f32, tile_f32, tile_f32],
            out_specs=tile_f32,
        ),
        compiler_params=pltpu.CompilerParams(
            dimension_semantics=("parallel",),
            vmem_limit_bytes=vmem_limit),
    )(gs0, a1, inv_d0, fgs_i8, an, gamma, vpd)


if __name__ == "__main__":
    key = jax.random.PRNGKey(0)
    k_fg, k_an, k_gam, k_vpd = jax.random.split(key, 4)

    R, L = 64, 128                                  # 8192 observations (small demo)
    # Deterministic per-FG parameters (module uses ones; perturb so the gather matters).
    gs0 = jnp.ones((NUM_FGS,), jnp.float32) + 0.1 * jnp.arange(NUM_FGS, dtype=jnp.float32)
    a1 = jnp.ones((NUM_FGS,), jnp.float32) - 0.05 * jnp.arange(NUM_FGS, dtype=jnp.float32)
    d0 = jnp.ones((NUM_FGS,), jnp.float32) + 0.2 * jnp.arange(NUM_FGS, dtype=jnp.float32)

    fgs = jax.random.randint(k_fg, (R, L), 0, NUM_FGS, dtype=jnp.int32)
    an = jax.random.uniform(k_an, (R, L), jnp.float32, 0.0, 30.0)        # assimilation
    gamma = jax.random.uniform(k_gam, (R, L), jnp.float32, 30.0, 60.0)   # compensation pt
    vpd = jax.random.uniform(k_vpd, (R, L), jnp.float32, 0.5, 3.0)       # VPD

    # Default block_rows clamps to the small demo and still yields a 2-step grid.
    gs = bbl_forward(gs0, a1, d0, fgs, an, gamma, vpd)
    gs = jax.block_until_ready(gs)

    # Pure-JAX reference check (exact BBL formula from the PyTorch module).
    ref = gs0[fgs] + a1[fgs] * an / (CA - gamma) / (1.0 + vpd / d0[fgs])
    assert gs.shape == (R, L) and gs.dtype == jnp.float32
    assert jnp.allclose(gs, ref, rtol=1e-5, atol=1e-6)

    print("KERNEL_OK")
</pallas_src>

<mosaic_0001>
module attributes {stable_mosaic.version = 11 : i64} {
  func.func @_bbl_kernel(%arg0: i32, %arg1: memref<4xf32, #tpu.memory_space<smem>>, %arg2: memref<4xf32, #tpu.memory_space<smem>>, %arg3: memref<4xf32, #tpu.memory_space<smem>>, %arg4: memref<32x128xi8, #tpu.memory_space<vmem>>, %arg5: memref<32x128xf32, #tpu.memory_space<vmem>>, %arg6: memref<32x128xf32, #tpu.memory_space<vmem>>, %arg7: memref<32x128xf32, #tpu.memory_space<vmem>>, %arg8: memref<32x128xf32, #tpu.memory_space<vmem>>) attributes {dimension_semantics = [#tpu.dimension_semantics<parallel>], iteration_bounds = array<i64: 2>, scalar_prefetch = 0 : i64, scratch_operands = 0 : i64, tpu.core_type = #tpu.core_type<tc>, window_params = [{transform_indices = @transform_0, window_bounds = array<i64: 4>}, {transform_indices = @transform_1, window_bounds = array<i64: 4>}, {transform_indices = @transform_2, window_bounds = array<i64: 4>}, {transform_indices = @transform_3, window_bounds = array<i64: 32, 128>}, {transform_indices = @transform_4, window_bounds = array<i64: 32, 128>}, {transform_indices = @transform_5, window_bounds = array<i64: 32, 128>}, {transform_indices = @transform_6, window_bounds = array<i64: 32, 128>}, {transform_indices = @transform_7, window_bounds = array<i64: 32, 128>}]} {
    %c0 = arith.constant 0 : index
    %c0_0 = arith.constant 0 : index
    %0 = vector.load %arg4[%c0, %c0_0] : memref<32x128xi8, #tpu.memory_space<vmem>>, vector<32x128xi8>
    %1 = arith.extsi %0 : vector<32x128xi8> to vector<32x128xi32>
    %c0_1 = arith.constant 0 : index
    %c0_2 = arith.constant 0 : index
    %2 = vector.load %arg5[%c0_1, %c0_2] : memref<32x128xf32, #tpu.memory_space<vmem>>, vector<32x128xf32>
    %c0_3 = arith.constant 0 : index
    %c0_4 = arith.constant 0 : index
    %3 = vector.load %arg6[%c0_3, %c0_4] : memref<32x128xf32, #tpu.memory_space<vmem>>, vector<32x128xf32>
    %c0_5 = arith.constant 0 : index
    %c0_6 = arith.constant 0 : index
    %4 = vector.load %arg7[%c0_5, %c0_6] : memref<32x128xf32, #tpu.memory_space<vmem>>, vector<32x128xf32>
    %c0_7 = arith.constant 0 : index
    %5 = memref.load %arg1[%c0_7] : memref<4xf32, #tpu.memory_space<smem>>
    %6 = vector.broadcast %5 : f32 to vector<32x128xf32>
    %c0_8 = arith.constant 0 : index
    %7 = memref.load %arg2[%c0_8] : memref<4xf32, #tpu.memory_space<smem>>
    %8 = vector.broadcast %7 : f32 to vector<32x128xf32>
    %c0_9 = arith.constant 0 : index
    %9 = memref.load %arg3[%c0_9] : memref<4xf32, #tpu.memory_space<smem>>
    %10 = vector.broadcast %9 : f32 to vector<32x128xf32>
    %c1_i32 = arith.constant 1 : i32
    %11 = vector.broadcast %c1_i32 : i32 to vector<32x128xi32>
    %12 = arith.cmpi eq, %1, %11 : vector<32x128xi32>
    %c1 = arith.constant 1 : index
    %13 = memref.load %arg1[%c1] : memref<4xf32, #tpu.memory_space<smem>>
    %14 = vector.broadcast %13 : f32 to vector<32x128xf32>
    %15 = arith.select %12, %14, %6 : vector<32x128xi1>, vector<32x128xf32>
    %c1_10 = arith.constant 1 : index
    %16 = memref.load %arg2[%c1_10] : memref<4xf32, #tpu.memory_space<smem>>
    %17 = vector.broadcast %16 : f32 to vector<32x128xf32>
    %18 = arith.select %12, %17, %8 : vector<32x128xi1>, vector<32x128xf32>
    %c1_11 = arith.constant 1 : index
    %19 = memref.load %arg3[%c1_11] : memref<4xf32, #tpu.memory_space<smem>>
    %20 = vector.broadcast %19 : f32 to vector<32x128xf32>
    %21 = arith.select %12, %20, %10 : vector<32x128xi1>, vector<32x128xf32>
    %c2_i32 = arith.constant 2 : i32
    %22 = vector.broadcast %c2_i32 : i32 to vector<32x128xi32>
    %23 = arith.cmpi eq, %1, %22 : vector<32x128xi32>
    %c2 = arith.constant 2 : index
    %24 = memref.load %arg1[%c2] : memref<4xf32, #tpu.memory_space<smem>>
    %25 = vector.broadcast %24 : f32 to vector<32x128xf32>
    %26 = arith.select %23, %25, %15 : vector<32x128xi1>, vector<32x128xf32>
    %c2_12 = arith.constant 2 : index
    %27 = memref.load %arg2[%c2_12] : memref<4xf32, #tpu.memory_space<smem>>
    %28 = vector.broadcast %27 : f32 to vector<32x128xf32>
    %29 = arith.select %23, %28, %18 : vector<32x128xi1>, vector<32x128xf32>
    %c2_13 = arith.constant 2 : index
    %30 = memref.load %arg3[%c2_13] : memref<4xf32, #tpu.memory_space<smem>>
    %31 = vector.broadcast %30 : f32 to vector<32x128xf32>
    %32 = arith.select %23, %31, %21 : vector<32x128xi1>, vector<32x128xf32>
    %c3_i32 = arith.constant 3 : i32
    %33 = vector.broadcast %c3_i32 : i32 to vector<32x128xi32>
    %34 = arith.cmpi eq, %1, %33 : vector<32x128xi32>
    %c3 = arith.constant 3 : index
    %35 = memref.load %arg1[%c3] : memref<4xf32, #tpu.memory_space<smem>>
    %36 = vector.broadcast %35 : f32 to vector<32x128xf32>
    %37 = arith.select %34, %36, %26 : vector<32x128xi1>, vector<32x128xf32>
    %c3_14 = arith.constant 3 : index
    %38 = memref.load %arg2[%c3_14] : memref<4xf32, #tpu.memory_space<smem>>
    %39 = vector.broadcast %38 : f32 to vector<32x128xf32>
    %40 = arith.select %34, %39, %29 : vector<32x128xi1>, vector<32x128xf32>
    %c3_15 = arith.constant 3 : index
    %41 = memref.load %arg3[%c3_15] : memref<4xf32, #tpu.memory_space<smem>>
    %42 = vector.broadcast %41 : f32 to vector<32x128xf32>
    %43 = arith.select %34, %42, %32 : vector<32x128xi1>, vector<32x128xf32>
    %cst = arith.constant 4.200000e+02 : f32
    %44 = vector.broadcast %cst : f32 to vector<32x128xf32>
    %45 = arith.subf %44, %3 : vector<32x128xf32>
    %46 = arith.mulf %4, %43 : vector<32x128xf32>
    %cst_16 = arith.constant 1.000000e+00 : f32
    %47 = vector.broadcast %cst_16 : f32 to vector<32x128xf32>
    %48 = arith.addf %47, %46 : vector<32x128xf32>
    %49 = arith.mulf %45, %48 : vector<32x128xf32>
    %50 = arith.mulf %40, %2 : vector<32x128xf32>
    %51 = arith.divf %50, %49 : vector<32x128xf32>
    %52 = arith.addf %37, %51 : vector<32x128xf32>
    %c0_17 = arith.constant 0 : index
    %c0_18 = arith.constant 0 : index
    %53 = vector.load %arg8[%c0_17, %c0_18] : memref<32x128xf32, #tpu.memory_space<vmem>>, vector<32x128xf32>
    tpu.vector_store %arg8[%c0_17, %c0_18], %52 {strides = array<i32>} : memref<32x128xf32, #tpu.memory_space<vmem>>, vector<32x128xf32>,
    return
  }
  func.func @transform_0(%arg0: i32) -> i32 {
    %c0_i32 = arith.constant 0 : i32
    %c0_i32_0 = arith.constant 0 : i32
    return %c0_i32 : i32
  }
  func.func @transform_1(%arg0: i32) -> i32 {
    %c0_i32 = arith.constant 0 : i32
    %c0_i32_0 = arith.constant 0 : i32
    return %c0_i32 : i32
  }
  func.func @transform_2(%arg0: i32) -> i32 {
    %c0_i32 = arith.constant 0 : i32
    %c0_i32_0 = arith.constant 0 : i32
    return %c0_i32 : i32
  }
  func.func @transform_3(%arg0: i32) -> (i32, i32) {
    %c0_i32 = arith.constant 0 : i32
    %c0_i32_0 = arith.constant 0 : i32
    return %arg0, %c0_i32 : i32, i32
  }
  func.func @transform_4(%arg0: i32) -> (i32, i32) {
    %c0_i32 = arith.constant 0 : i32
    %c0_i32_0 = arith.constant 0 : i32
    return %arg0, %c0_i32 : i32, i32
  }
  func.func @transform_5(%arg0: i32) -> (i32, i32) {
    %c0_i32 = arith.constant 0 : i32
    %c0_i32_0 = arith.constant 0 : i32
    return %arg0, %c0_i32 : i32, i32
  }
  func.func @transform_6(%arg0: i32) -> (i32, i32) {
    %c0_i32 = arith.constant 0 : i32
    %c0_i32_0 = arith.constant 0 : i32
    return %arg0, %c0_i32 : i32, i32
  }
  func.func @transform_7(%arg0: i32) -> (i32, i32) {
    %c0_i32 = arith.constant 0 : i32
    %c0_i32_0 = arith.constant 0 : i32
    return %arg0, %c0_i32 : i32, i32
  }
}

</mosaic_0001>

<bundles_post_ra>
// kernel: tpu_custom_call.1
= control target key start
LH: loop header
LB: loop body
LE: loop exit
PB: predicated region body
PF: predicated region fallthrough
CT: control target
= control target key end

     0   :  { %s1774_s0 = inlined_call_operand.hbm [shape: f32[4], index: 0, kind: input, shape index: {}]   ;;  %s1775_s1 = inlined_call_operand.hbm [shape: f32[4], index: 1, kind: input, shape index: {}]   ;;  %s1776_s2 = inlined_call_operand.vmem [shape: f32[4], index: 2, kind: input, shape index: {}]   ;;  %s1777_s3 = inlined_call_operand.hbm [shape: s8[64,128], index: 3, kind: input, shape index: {}]   ;;  %s1778_s4 = inlined_call_operand.hbm [shape: f32[64,128], index: 4, kind: input, shape index: {}]   ;;  %s1779_s5 = inlined_call_operand.hbm [shape: f32[64,128], index: 5, kind: input, shape index: {}]   ;;  %s1780_s6 = inlined_call_operand.hbm [shape: f32[64,128], index: 6, kind: input, shape index: {}]   ;;  %s1781_s7 = inlined_call_operand.hbm [shape: f32[64,128], index: 7, kind: output, shape index: {}]  }
   0x1   :  { %1793 = sst [smem:[#allocation30_spill]] %s1774_s0 }
   0x2   :  { %1794 = sst [smem:[#allocation31_spill]] %s1775_s1 }
   0x3   :  { %1795 = sst [smem:[#allocation32_spill]] %s1776_s2 }
   0x4   :  { %1796 = sst [smem:[#allocation33_spill]] %s1778_s4 }
   0x5   :  { %12 = vsyncpa [#allocation5], 0 }
   0x6   :  { %13 = vsyncpa [#allocation8], 0 }
   0x7   :  { %14 = vsyncpa [#allocation6], 0 }
   0x8   :  { %15 = vsyncpa [#allocation3], 0 }
   0x9   :  { %17 = vsyncpa [#allocation3 + $0x1], 0 }
   0xa   :  { %18 = vsyncpa [#allocation12], 0 }
   0xb   :  { %20 = vsyncpa [#allocation12 + $0x1], 0 }
   0xc   :  { %21 = vsyncpa [#allocation15], 0 }
   0xd   :  { %23 = vsyncpa [#allocation15 + $0x1], 0 }
   0xe   :  { %24 = vsyncpa [#allocation4], 0 }
   0xf   :  { %26 = vsyncpa [#allocation4 + $0x1], 0  ;;  %s1277_s24 = smov 0   ;;  %s1279_s25 = smov 0  }
  0x10   :  { %s1281_s26 = smov 0   ;;  %s1283_s27 = smov 0  }
  0x11 LB: > { %1797 = sst [smem:[#allocation24_spill]] %s1216_s24  ;;  %s1298_s28 = sadd.s32 1, %s1228_s27   ;;  %s1228_s27 = sphi %s1283_s27, %s1832_s27   ;;  %s1224_s26 = sphi %s1281_s26, %s1834_s26   ;;  %s1220_s25 = sphi %s1279_s25, %s1836_s25   ;;  %s1216_s24 = sphi %s1277_s24, %s1835_s24  }
  0x12   : > { %1798 = sst [smem:[#allocation25_spill]] %s1224_s26  ;;  %s102_s29 = sadd.s32 1, %s1224_s26 }
  0x13   : > { %1799 = sst [smem:[#allocation26_spill]] %s1298_s28  ;;  %s99_s30 = ssub.s32 %s1228_s27, %s1298_s28 }
  0x14   : > { %p109_p0 = scmp.ne.s32.totalorder %s1224_s26, %s1220_s25  ;;  %p100_p1 = scmp.eq.s32.totalorder %s99_s30, 0 }
  0x15   : > { %p110_p2 = scmp.eq.s32.totalorder %s1228_s27, 0  ;;  %p925_p4 = scmp.lt.s32.totalorder %s1228_s27, 2 }
  0x16   : > { %s1309_s8 = scalar_select %p100_p1, %s1224_s26, %s102_s29  }
  0x17   : > { %p111_p5 = por %p110_p2, %p109_p0  ;;  %s1315_s9 = sand.u32 1, %s1224_s26  }
  0x18   : > { %1800 = sst [smem:[#allocation27_spill]] %s1309_s8  ;;  %s292_s10 = sand.u32 1, %s1228_s27  }
  0x19   : > { %s1319_s11 = sshll.u32 %s1315_s9, 5  ;;  %p1321_p6 = pnand %p925_p4, %p111_p5 }
  0x1a   : > { %s1326_s13 = sshll.u32 %s1228_s27, 5  ;;  %s1802_s4 = sld [smem:[#allocation33_spill]] }
  0x1b   : > { %s296_s18 = scalar_lea.vmem [#allocation11], %s1319_s11  ;;  %s1333_s20 = scalar_lea.sflag [#allocation12], %s292_s10 }
  0x1c   : > { %s304_s19 = sshll.u32 %s296_s18, 4  ;;  %p981_p8 = pneg %p1321_p6  ;;  %s305_s19 = int_to_ptr.vmem [resolvable:$true] %s304_s19 }
  0x20   : > { %s301_s16 = scalar_lea.hbm %s1802_s4, %s1326_s13  ;;  %s984_s30 = scalar_lea.hbm %s1802_s4, 64 }
  0x21   : > { %s302_s17 = sshll.u32 %s301_s16, 4  ;;  %s303_s17 = int_to_ptr.hbm [resolvable:$true] %s302_s17 }
  0x22   : > { %s977_s21 = sshra.s32 %s303_s17, 4  ;;  %s978_s21 = int_to_ptr.hbm [resolvable:$true] %s977_s21 }
  0x23   : > { %s979_s22 = scalar_lea.hbm %s978_s21, 32  ;;  %p985_p11 = scmp.lt.s32.totalorder %s978_s21, %s1802_s4 }
  0x24   : > { %p980_p7 = scmp.ne.s32.totalorder %s978_s21, %s979_s22  ;;  %p986_p12 = scmp.lt.s32.totalorder %s984_s30, %s979_s22 }
  0x26   : > { %p982_p9 = pnand %p981_p8, %p980_p7  ;;  %p987_p13 = por %p986_p12, %p985_p11 }
  0x28   : > { %p983_p10 = pneg %p982_p9 }
  0x2a   : > { %p988_p1 = pnand %p987_p13, %p983_p10 }
  0x2c   : > { %991 = shalt.err (!%p988_p1)
}
  0x2d   : > { %s1782_s10 = smov 128   ;;  %s1784_s16 = smov 8  }
  0x2e   : > { %911 = dma.hbm_to_vmem [thread:$0]  (!%p1321_p6), %s303_s17, 512, %s305_s19, %s1333_s20, %s1782_s10, %s1782_s10, %s1784_s16  }
  0x2f   : > { %s1353_s18 = sadd.s32 4294967295, %s1228_s27   ;;  %s829_s21 = sadd.s32 4294967294, %s1228_s27  }
  0x30   : > { %p115_p2 = scmp.ne.s32.totalorder %s1220_s25, %s1216_s24  ;;  %p116_p4 = scmp.eq.s32.totalorder %s1353_s18, 0 }
  0x31   : > { %p217_p5 = scmp.eq.s32.totalorder %s1353_s18, 1  ;;  %p223_p7 = scmp.eq.s32.totalorder %s829_s21, 1 }
  0x32   : > { %p1362_p9 = por %p116_p4, %p115_p2  ;;  %p830_p10 = scmp.ge.s32.totalorder %s1228_s27, 1 }
  0x33   : > { %p1370_p11 = por %p217_p5, %p109_p0  ;;  %p1374_p12 = por %p223_p7, %p115_p2 }
  0x34   : > { %p230_p13 = scmp.lt.s32.totalorder %s1228_s27, 3  ;;  %s1808_s0 = sld [smem:[#allocation30_spill]] }
  0x35   : > { %s1804_s17 = scalar_select %p1370_p11, 1, 0 }
  0x36   : > { %s1806_s19 = scalar_select %p1374_p12, 1, 0 }
  0x37   : > { %1805 = sst [smem:[#allocation28_spill]] %s1804_s17  ;;  %p1382_p1 = pnand %p830_p10, %p230_p13 }
  0x38   : > { %1807 = sst [smem:[#allocation29_spill]] %s1806_s19  ;;  %s835_s23 = sshll.u32 %s1315_s9, 3 }
  0x39   : > { %s1810_s1 = sld [smem:[#allocation31_spill]]  ;;  %p895_p0 = pneg %p1382_p1 }
  0x3a   : > { %s242_s30 = sshll.u32 %s1808_s0, 4  ;;  %s1811_s2 = sld [smem:[#allocation32_spill]]  ;;  %s243_s30 = int_to_ptr.hbm [resolvable:$true] %s242_s30 }
  0x3b   : > { %p896_p2 = pnand %p895_p0, %p116_p4  ;;  %s1232_s29 = smov [#allocation2]  }
  0x3c   : > { %s1233_s0 = smov [#allocation7]   ;;  %s1234_s15 = smov [#allocation9]  }
  0x3d   : > { %898 = dma.hbm_to_smem (!%p896_p2), %s243_s30, 16, %s1232_s29, [#allocation5]  }
  0x3e   : > { %s836_s21 = sshll.u32 %s1228_s27, 3  ;;  %s323_s17 = scalar_lea.hbm %s1779_s5, %s1326_s13 }
  0x3f   : > { %s252_s10 = sshll.u32 %s1810_s1, 4  ;;  %s277_s1 = scalar_lea.vmem [#allocation10], %s835_s23  ;;  %s253_s10 = int_to_ptr.hbm [resolvable:$true] %s252_s10 }
  0x40   : > { %s262_s8 = sshll.u32 %s1811_s2, 4  ;;  %s285_s26 = sshll.u32 %s277_s1, 4  ;;  %s263_s8 = int_to_ptr.vmem [resolvable:$true] %s262_s8  ;;  %s286_s26 = int_to_ptr.vmem [resolvable:$true] %s285_s26 }
  0x41   : > { %901 = dma.hbm_to_smem (!%p896_p2), %s253_s10, 16, %s1233_s0, [#allocation8]  }
  0x42   : > { %904 = dma.vmem_to_smem (!%p896_p2), %s263_s8, 16, %s1234_s15, [#allocation6]  }
  0x43   : > { %s281_s4 = scalar_lea.hbm %s1777_s3, %s836_s21  ;;  %s274_s30 = scalar_lea.sflag [#allocation3], %s1315_s9 }
  0x44   : > { %s283_s16 = sshll.u32 %s281_s4, 4  ;;  %s1059_s28 = scalar_lea.hbm %s1777_s3, 16  ;;  %s284_s16 = int_to_ptr.hbm [resolvable:$true] %s283_s16 }
  0x45   : > { %s1052_s29 = sshra.s32 %s284_s16, 4  ;;  %s1053_s29 = int_to_ptr.hbm [resolvable:$true] %s1052_s29 }
  0x46   : > { %s1054_s0 = scalar_lea.hbm %s1053_s29, 8  ;;  %p1060_p13 = scmp.lt.s32.totalorder %s1053_s29, %s1777_s3 }
  0x47   : > { %p1055_p5 = scmp.ne.s32.totalorder %s1053_s29, %s1054_s0  ;;  %p1061_p0 = scmp.lt.s32.totalorder %s1059_s28, %s1054_s0 }
  0x49   : > { %p1057_p7 = pnand %p1055_p5, %p981_p8  ;;  %p1062_p2 = por %p1061_p0, %p1060_p13 }
  0x4b   : > { %p1058_p10 = pneg %p1057_p7 }
  0x4d   : > { %p1063_p3 = pnand %p1062_p2, %p1058_p10 }
  0x4f   : > { %1066 = shalt.err (!%p1063_p3)
}
  0x50   : > { %908 = dma.hbm_to_vmem [thread:$0]  (!%p1321_p6), %s284_s16, 128, %s286_s26, %s274_s30  }
  0x51   : > { %s324_s2 = sshll.u32 %s323_s17, 4  ;;  %s318_s24 = scalar_lea.vmem [#allocation13], %s1319_s11  ;;  %s325_s2 = int_to_ptr.hbm [resolvable:$true] %s324_s2 }
  0x52   : > { %s326_s23 = sshll.u32 %s318_s24, 4  ;;  %s1082_s15 = sshra.s32 %s325_s2, 4  ;;  %s327_s23 = int_to_ptr.vmem [resolvable:$true] %s326_s23  ;;  %s1083_s15 = int_to_ptr.hbm [resolvable:$true] %s1082_s15 }
  0x53   : > { %s1084_s21 = scalar_lea.hbm %s1083_s15, 32  ;;  %s1089_s0 = scalar_lea.hbm %s1779_s5, 64 }
  0x54   : > { %p1085_p5 = scmp.ne.s32.totalorder %s1083_s15, %s1084_s21  ;;  %p1090_p3 = scmp.lt.s32.totalorder %s1083_s15, %s1779_s5 }
  0x55   : > { %p1091_p10 = scmp.lt.s32.totalorder %s1089_s0, %s1084_s21 }
  0x56   : > { %p1087_p7 = pnand %p1085_p5, %p981_p8 }
  0x57   : > { %p1092_p0 = por %p1091_p10, %p1090_p3 }
  0x58   : > { %p1088_p13 = pneg %p1087_p7 }
  0x5a   : > { %p1093_p2 = pnand %p1092_p0, %p1088_p13 }
  0x5c   : > { %1096 = shalt.err (!%p1093_p2)
}
  0x5d   : > { %s1812_s26 = smov 8   ;;  %s1813_s17 = smov 128  }
  0x5e   : > { %914 = dma.hbm_to_vmem [thread:$0]  (!%p1321_p6), %s325_s2, 512, %s327_s23, %s1333_s20, %s1813_s17, %s1813_s17, %s1812_s26  }
  0x5f   : > { %s345_s28 = scalar_lea.hbm %s1780_s6, %s1326_s13  ;;  %s340_s10 = scalar_lea.vmem [#allocation14], %s1319_s11 }
  0x60   : > { %s348_s19 = sshll.u32 %s340_s10, 4  ;;  %s346_s24 = sshll.u32 %s345_s28, 4  ;;  %s349_s19 = int_to_ptr.vmem [resolvable:$true] %s348_s19  ;;  %s347_s24 = int_to_ptr.hbm [resolvable:$true] %s346_s24 }
  0x61   : > { %s337_s15 = scalar_lea.sflag [#allocation15], %s1315_s9  ;;  %s1112_s21 = sshra.s32 %s347_s24, 4  ;;  %s1113_s21 = int_to_ptr.hbm [resolvable:$true] %s1112_s21 }
  0x62   : > { %s1114_s4 = scalar_lea.hbm %s1113_s21, 32  ;;  %s1119_s2 = scalar_lea.hbm %s1780_s6, 64 }
  0x63   : > { %p1115_p5 = scmp.ne.s32.totalorder %s1113_s21, %s1114_s4  ;;  %p1120_p3 = scmp.lt.s32.totalorder %s1113_s21, %s1780_s6 }
  0x64   : > { %p1121_p10 = scmp.lt.s32.totalorder %s1119_s2, %s1114_s4 }
  0x65   : > { %p1117_p7 = pnand %p1115_p5, %p981_p8 }
  0x66   : > { %p1122_p0 = por %p1121_p10, %p1120_p3 }
  0x67   : > { %p1118_p13 = pneg %p1117_p7 }
  0x69   : > { %p1123_p2 = pnand %p1122_p0, %p1118_p13 }
  0x6b   : > { %1126 = shalt.err (!%p1123_p2)
}
  0x6c   : > { %917 = dma.hbm_to_vmem [thread:$0]  (!%p1321_p6), %s347_s24, 512, %s349_s19, %s337_s15, %s1813_s17, %s1813_s17, %s1812_s26  }
  0x6d   : > { %360 = sbr.rel (%p1382_p1) target bundleno = 184 (0xb8), region = 48 }
  0x72   : > { %1187 = dma.done.wait (%p116_p4), [#allocation5], 16  }
  0x73   : > { %1189 = vsyncadd (%p116_p4), [#allocation5], 4294967280 }
  0x74   : > { %1191 = dma.done.wait (%p116_p4), [#allocation8], 16  }
  0x75   : > { %1193 = vsyncadd (%p116_p4), [#allocation8], 4294967280 }
  0x76   : > { %1195 = dma.done.wait (%p116_p4), [#allocation6], 16  }
  0x77   : > { %1197 = vsyncadd (%p116_p4), [#allocation6], 4294967280  ;;  %s1468_s9 = sand.u32 1, %s1220_s25  }
  0x78   : > { %s850_s11 = sshll.u32 %s1468_s9, 3  ;;  %s378_s12 = scalar_lea.sflag [#allocation3], %s1468_s9 }
  0x79   : > { %s381_s14 = scalar_lea.vmem [#allocation10], %s850_s11 }
  0x7a   : > { %1199 = dma.done.wait (%p1362_p9), %s378_s12, 128  }
  0x7b   : > { %1201 = vsyncadd (%p1362_p9), %s378_s12, 4294967168  ;;  %s387_s0 = sand.u32 1, %s1353_s18   ;;  %s1478_s1 = sshll.u32 %s1468_s9, 5 }
  0x7c   : > { %s388_s8 = scalar_lea.sflag [#allocation12], %s387_s0  ;;  %s1481_s26 = scalar_lea.vmem [#allocation11], %s1478_s1 }
  0x7d   : > { %1203 = dma.done.wait (%p1362_p9), %s388_s8, 1024  }
  0x7e   : > { %1205 = vsyncadd (%p1362_p9), %s388_s8, 4294966272  ;;  %s1488_s17 = scalar_lea.vmem [#allocation13], %s1478_s1  ;;  %s408_s16 = scalar_lea.sflag [#allocation15], %s1468_s9 }
  0x7f   : > { %s1492_s30 = scalar_lea.vmem [#allocation14], %s1478_s1 }
  0x80   : > { %1207 = dma.done.wait (%p1362_p9), %s408_s16, 512  }
  0x81   : > { %1209 = vsyncadd (%p1362_p9), %s408_s16, 4294966784 }
  0x82   : > { %417 = sfence }
  0x83   : > { %v463_v0 = vld [vmem:[%s381_s14] sm:$0xff]  ;;  %s484_s28 = sld [smem:[#allocation9]]  ;;  %v472_v5 = vld [vmem:[%s1488_s17] sm:$0xff]  ;;  %v473_v7 = vld [vmem:[%s1488_s17 + $0x8] sm:$0xff]  ;;  %s872_s13 = sshll.u32 %s1353_s18, 5 }
  0x84   : > { %s1498_s10 = sld [smem:[#allocation2]]  ;;  %v1500_v1 = vunpack.c.0.s8 %v463_v0  ;;  %v1502_v2 = vunpack.c.1.s8 %v463_v0  ;;  %v1506_v3 = vunpack.c.2.s8 %v463_v0  ;;  %v1519_v8 = vunpack.c.3.s8 %v463_v0  ;;  %v476_v15 = vld [vmem:[%s1492_s30] sm:$0xff]  ;;  %v474_v18 = vld [vmem:[%s1488_s17 + $0x10] sm:$0xff]  ;;  %v477_v20 = vld [vmem:[%s1492_s30 + $0x8] sm:$0xff]  ;;  %s652_s12 = scalar_lea.hbm %s1781_s7, %s872_s13 }
  0x85   : > { %s857_s19 = sld [smem:[#allocation9 + $0x1]]  ;;  %v552_v13 = vsub.f32 420.0, %v472_v5  ;;  %v553_v14 = vsub.f32 420.0, %v473_v7  ;;  %v478_v21 = vld [vmem:[%s1492_s30 + $0x10] sm:$0xff]  ;;  %v554_v29 = vsub.f32 420.0, %v474_v18  ;;  %v475_v44 = vld [vmem:[%s1488_s17 + $0x18] sm:$0xff] }
  0x86   : > { %s1504_s24 = sld [smem:[#allocation7]]  ;;  %vm486_vm0 = vcmp.eq.s32.totalorder %v1500_v1, 1  ;;  %vm487_vm1 = vcmp.eq.s32.totalorder %v1502_v2, 1  ;;  %vm488_vm2 = vcmp.eq.s32.totalorder %v1506_v3, 1  ;;  %vm508_vm3 = vcmp.eq.s32.totalorder %v1500_v1, 2  ;;  %v479_v45 = vld [vmem:[%s1492_s30 + $0x18] sm:$0xff] }
  0x87   : > { %s1508_s15 = sld [smem:[#allocation2 + $0x1]]  ;;  %vm509_vm4 = vcmp.eq.s32.totalorder %v1502_v2, 2  ;;  %vm510_vm5 = vcmp.eq.s32.totalorder %v1506_v3, 2  ;;  %vm530_vm6 = vcmp.eq.s32.totalorder %v1500_v1, 3  ;;  %vm531_vm7 = vcmp.eq.s32.totalorder %v1502_v2, 3  ;;  %v468_v61 = vld [vmem:[%s1481_s26] sm:$0xff] }
  0x88   : > { %s860_s22 = sld [smem:[#allocation9 + $0x2]]  ;;  %vm532_vm8 = vcmp.eq.s32.totalorder %v1506_v3, 3  ;;  %vm489_vm9 = vcmp.eq.s32.totalorder %v1519_v8, 1  ;;  %vm511_vm10 = vcmp.eq.s32.totalorder %v1519_v8, 2  ;;  %vm533_vm11 = vcmp.eq.s32.totalorder %v1519_v8, 3  ;;  %v469_v0 = vld [vmem:[%s1481_s26 + $0x8] sm:$0xff] }
  0x89   : > { %v485_v4 = vstv %s484_s28  ;;  %s1511_s21 = sld [smem:[#allocation7 + $0x1]]  ;;  %v555_v56 = vsub.f32 420.0, %v475_v44  ;;  %v470_v5 = vld [vmem:[%s1481_s26 + $0x10] sm:$0xff]  ;;  %s458_s14 = scalar_lea.vmem [#allocation16], %s1478_s1 }
  0x8a   : > { %s1516_s4 = sld [smem:[#allocation9 + $0x3]]  ;;  %v1543_v19 = vstv %s1498_s10  ;;  %s653_s0 = sshll.u32 %s458_s14, 4  ;;  %s654_s0 = int_to_ptr.vmem [resolvable:$true] %s653_s0 }
  0x8b   : > { %v503_v6 = vstv %s857_s19  ;;  %s1527_s29 = sld [smem:[#allocation7 + $0x2]]  ;;  %s641_s1 = scalar_lea.sflag [#allocation4], %s1468_s9 }
  0x8c   : > { %v504_v9 = vsel %vm486_vm0, %v503_v6, %v485_v4  ;;  %v505_v10 = vsel %vm487_vm1, %v503_v6, %v485_v4  ;;  %v506_v11 = vsel %vm488_vm2, %v503_v6, %v485_v4  ;;  %s1533_s20 = sld [smem:[#allocation2 + $0x2]]  ;;  %v483_v23 = vstv %s1504_s24  ;;  %s1162_s10 = scalar_lea.hbm %s1781_s7, 64 }
  0x8d   : > { %s1545_s2 = sld [smem:[#allocation7 + $0x3]]  ;;  %v491_v24 = vstv %s1508_s15  ;;  %v507_v36 = vsel %vm489_vm9, %v503_v6, %v485_v4 }
  0x8e   : > { %v525_v12 = vstv %s860_s22  ;;  %s1562_s23 = sld [smem:[#allocation2 + $0x3]]  ;;  %v492_v33 = vsel %vm486_vm0, %v491_v24, %v1543_v19  ;;  %v493_v41 = vsel %vm487_vm1, %v491_v24, %v1543_v19  ;;  %v494_v60 = vsel %vm488_vm2, %v491_v24, %v1543_v19 }
  0x8f   : > { %v526_v16 = vsel %vm508_vm3, %v525_v12, %v504_v9  ;;  %v527_v17 = vsel %vm509_vm4, %v525_v12, %v505_v10  ;;  %v528_v22 = vsel %vm510_vm5, %v525_v12, %v506_v11  ;;  %v497_v25 = vstv %s1511_s21 }
  0x90   : > { %v547_v26 = vstv %s1516_s4  ;;  %v498_v34 = vsel %vm486_vm0, %v497_v25, %v483_v23  ;;  %v499_v39 = vsel %vm487_vm1, %v497_v25, %v483_v23  ;;  %v500_v42 = vsel %vm488_vm2, %v497_v25, %v483_v23 }
  0x91   : > { %v548_v27 = vsel %vm530_vm6, %v547_v26, %v526_v16  ;;  %v549_v28 = vsel %vm531_vm7, %v547_v26, %v527_v17  ;;  %v550_v32 = vsel %vm532_vm8, %v547_v26, %v528_v22  ;;  %v1575_v37 = vstv %s1527_s29 }
  0x92   : > { %v556_v30 = vmul.f32 %v548_v27, %v476_v15  ;;  %v557_v31 = vmul.f32 %v549_v28, %v477_v20  ;;  %v558_v35 = vmul.f32 %v550_v32, %v478_v21  ;;  %v529_v46 = vsel %vm511_vm10, %v525_v12, %v507_v36 }
  0x93   : > { %v1589_v47 = vstv %s1533_s20  ;;  %v551_v50 = vsel %vm533_vm11, %v547_v26, %v529_v46  ;;  %v520_v51 = vsel %vm508_vm3, %v1575_v37, %v498_v34  ;;  %v1599_v52 = vstv %s1545_s2 }
  0x94   : > { %v560_v38 = vadd.f32 1.0, %v556_v30  ;;  %v561_v40 = vadd.f32 1.0, %v557_v31  ;;  %v562_v43 = vadd.f32 1.0, %v558_v35  ;;  %v521_v53 = vsel %vm509_vm4, %v1575_v37, %v499_v39 }
  0x95   : > { %v522_v55 = vsel %vm510_vm5, %v1575_v37, %v500_v42  ;;  %v559_v57 = vmul.f32 %v551_v50, %v479_v45  ;;  %v514_v58 = vsel %vm508_vm3, %v1589_v47, %v492_v33  ;;  %v515_v59 = vsel %vm509_vm4, %v1589_v47, %v493_v41 }
  0x96   : > { %v564_v48 = vmul.f32 %v560_v38, %v552_v13  ;;  %v1591_v49 = vmul.f32 %v561_v40, %v553_v14  ;;  %v1604_v54 = vmul.f32 %v562_v43, %v554_v29  ;;  %v1621_v62 = vstv %s1562_s23 }
  0x97   : > { %v542_v63 = vsel %vm530_vm6, %v1599_v52, %v520_v51  ;;  %v543_v4 = vsel %vm531_vm7, %v1599_v52, %v521_v53  ;;  %v544_v6 = vsel %vm532_vm8, %v1599_v52, %v522_v55  ;;  %v1638_v7 = vsel %vm510_vm5, %v1589_v47, %v494_v60 }
  0x98   : > { %969 = vrcp.f32 %v564_v48  ;;  %v563_v9 = vadd.f32 1.0, %v559_v57  ;;  %v1643_v10 = vsel %vm530_vm6, %v1621_v62, %v514_v58  ;;  %v568_v11 = vmul.f32 %v542_v63, %v468_v61 }
  0x99   : > { %971 = vrcp.f32 %v1591_v49  ;;  %v1648_v12 = vsel %vm531_vm7, %v1621_v62, %v515_v59  ;;  %v569_v13 = vmul.f32 %v543_v4, %v469_v0  ;;  %v570_v15 = vmul.f32 %v544_v6, %v470_v5  ;;  %v471_v0 = vld [vmem:[%s1481_s26 + $0x18] sm:$0xff]  ;;  %s655_s26 = sshll.u32 %s652_s12, 4  ;;  %s656_s26 = int_to_ptr.hbm [resolvable:$true] %s655_s26 }
  0x9a   : > { %973 = vrcp.f32 %v1604_v54  ;;  %v1653_v16 = vsel %vm489_vm9, %v491_v24, %v1543_v19  ;;  %v501_v17 = vsel %vm489_vm9, %v497_v25, %v483_v23  ;;  %v1657_v1 = vmul.f32 %v563_v9, %v555_v56  ;;  %s1156_s17 = sshra.s32 %s656_s26, 4  ;;  %s1157_s17 = int_to_ptr.hbm [resolvable:$true] %s1156_s17 }
  0x9b   : > { %vm577_vm12 = vweird.f32 %v564_v48  ;;  %v581_v21 = vand.u32 2147483647, %v564_v48  ;;  %v583_v2 = vand.u32 2147483648, %v564_v48  ;;  %vm592_vm13 = vweird.f32 %v1591_v49  ;;  %s1158_s16 = scalar_lea.hbm %s1157_s17, 32  ;;  %p1163_p9 = scmp.lt.s32.totalorder %s1157_s17, %s1781_s7 }
  0x9c   : > { %v596_v27 = vand.u32 2147483647, %v1591_v49  ;;  %975 = vrcp.f32 %v1657_v1  ;;  %v598_v23 = vand.u32 2147483648, %v1591_v49  ;;  %v611_v28 = vand.u32 2147483647, %v1604_v54  ;;  %p1159_p6 = scmp.ne.s32.totalorder %s1157_s17, %s1158_s16  ;;  %p1164_p1 = scmp.lt.s32.totalorder %s1162_s10, %s1158_s16 }
  0x9d   : > { %v613_v29 = vand.u32 2147483648, %v1604_v54  ;;  %vm607_vm0 = vweird.f32 %v1604_v54  ;;  %vm1673_vm3 = vcmp.eq.f32.partialorder %v581_v21, 8.507059e+37  ;;  %v584_v34 = vor.u32 1.1754944e-38, %v583_v2 }
  0x9e   : > { %v970_v14 = vpop.eup %969  ;;  %v523_v36 = vsel %vm511_vm10, %v1575_v37, %v501_v17  ;;  %vm1686_vm5 = vcmp.eq.f32.partialorder %v596_v27, 8.507059e+37  ;;  %v599_v41 = vor.u32 1.1754944e-38, %v598_v23  ;;  %vm1694_vm7 = vcmp.eq.f32.partialorder %v611_v28, 8.507059e+37  ;;  %p1160_p8 = pnand %p1159_p6, %p1370_p11  ;;  %p1165_p5 = por %p1164_p1, %p1163_p9 }
  0x9f   : > { %v972_v18 = vpop.eup %971  ;;  %v573_v20 = vmul.f32 %v970_v14, %v564_v48  ;;  %vm578_vm14 = vweird.f32 %v970_v14  ;;  %v614_v46 = vor.u32 1.1754944e-38, %v613_v29  ;;  %vm622_vm9 = vweird.f32 %v1657_v1 }
  0xa0   : > { %v974_v22 = vpop.eup %973  ;;  %v588_v26 = vmul.f32 %v972_v18, %v1591_v49  ;;  %vm593_vm15 = vweird.f32 %v972_v18  ;;  %vm1669_vm2 = vmor %vm577_vm12, %vm578_vm14  ;;  %v626_v51 = vand.u32 2147483647, %v1657_v1  ;;  %v628_v55 = vand.u32 2147483648, %v1657_v1  ;;  %p1161_p4 = pneg %p1160_p8 }
  0xa1   : > { %v574_v19 = vsub.f32 1.0, %v573_v20  ;;  %v603_v24 = vmul.f32 %v974_v22, %v1604_v54  ;;  %vm608_vm1 = vweird.f32 %v974_v22  ;;  %vm1682_vm4 = vmor %vm592_vm13, %vm593_vm15  ;;  %v538_v61 = vsel %vm532_vm8, %v1621_v62, %v1638_v7 }
  0xa2   : > { %v589_v25 = vsub.f32 1.0, %v588_v26  ;;  %v976_v43 = vpop.eup %975  ;;  %vm1690_vm6 = vmor %vm607_vm0, %vm608_vm1  ;;  %v545_v4 = vsel %vm533_vm11, %v1599_v52, %v523_v36  ;;  %v517_v3 = vsel %vm511_vm10, %v1589_v47, %v1653_v16  ;;  %vm627_vm13 = vcmp.eq.f32.partialorder %v626_v51, 8.507059e+37  ;;  %p1166_p7 = pnand %p1165_p5, %p1161_p4 }
  0xa3   : > { %v575_v30 = vmul.f32 %v970_v14, %v574_v19  ;;  %v604_v31 = vsub.f32 1.0, %v603_v24  ;;  %v618_v50 = vmul.f32 %v976_v43, %v1657_v1  ;;  %vm623_vm12 = vweird.f32 %v976_v43 }
  0xa4   : > { %v590_v35 = vmul.f32 %v972_v18, %v589_v25  ;;  %vm1732_vm8 = vmor %vm622_vm9, %vm623_vm12 }
  0xa5   : > { %v576_v38 = vadd.f32 %v970_v14, %v575_v30  ;;  %v605_v42 = vmul.f32 %v974_v22, %v604_v31  ;;  %v619_v59 = vsub.f32 1.0, %v618_v50 }
  0xa6   : > { %v591_v44 = vadd.f32 %v972_v18, %v590_v35 }
  0xa7   : > { %v580_v48 = vsel %vm1669_vm2, %v970_v14, %v576_v38  ;;  %v606_v49 = vadd.f32 %v974_v22, %v605_v42  ;;  %v620_v9 = vmul.f32 %v976_v43, %v619_v59  ;;  %v539_v14 = vsel %vm533_vm11, %v1621_v62, %v517_v3 }
  0xa8   : > { %v585_v53 = vsel %vm1673_vm3, %v584_v34, %v580_v48  ;;  %v595_v54 = vsel %vm1682_vm4, %v972_v18, %v591_v44 }
  0xa9   : > { %v586_v56 = vmul.f32 %v585_v53, %v568_v11  ;;  %v600_v57 = vsel %vm1686_vm5, %v599_v41, %v595_v54  ;;  %v610_v58 = vsel %vm1690_vm6, %v974_v22, %v606_v49 }
  0xaa   : > { %v601_v60 = vmul.f32 %v600_v57, %v569_v13  ;;  %v615_v63 = vsel %vm1694_vm7, %v614_v46, %v610_v58  ;;  %v629_v13 = vor.u32 1.1754944e-38, %v628_v55 }
  0xab   : > { %v632_v5 = vadd.f32 %v586_v56, %v1643_v10  ;;  %v616_v6 = vmul.f32 %v615_v63, %v570_v15  ;;  %v571_v10 = vmul.f32 %v545_v4, %v471_v0 }
  0xac   : > { %v633_v11 = vadd.f32 %v601_v60, %v1648_v12  ;;  %v621_v12 = vadd.f32 %v976_v43, %v620_v9 }
  0xad   : > { %636 = vst [vmem:[%s458_s14] sm:$0xff] %v632_v5  ;;  %v634_v52 = vadd.f32 %v616_v6, %v538_v61 }
  0xae   : > { %637 = vst [vmem:[%s458_s14 + $0x8] sm:$0xff] %v633_v11  ;;  %v625_v47 = vsel %vm1732_vm8, %v976_v43, %v621_v12 }
  0xaf   : > { %638 = vst [vmem:[%s458_s14 + $0x10] sm:$0xff] %v634_v52  ;;  %v630_v15 = vsel %vm627_vm13, %v629_v13, %v625_v47 }
  0xb0   : > { %v631_v16 = vmul.f32 %v630_v15, %v571_v10 }
  0xb2   : > { %v635_v17 = vadd.f32 %v631_v16, %v539_v14 }
  0xb4   : > { %639 = vst [vmem:[%s458_s14 + $0x18] sm:$0xff] %v635_v17 }
  0xb5   : > { %1169 = shalt.err (!%p1166_p7)
}
  0xb6   : > { %s1235_s9 = smov 128   ;;  %s1236_s15 = smov 8  }
  0xb7   : > { %893 = dma.vmem_to_hbm [thread:$0]  (%p1370_p11), %s654_s0, 512, %s656_s26, %s641_s1, %s1235_s9, %s1235_s9, %s1236_s15  }
  0xb8 PF: > { %s1829_s22 = sld [smem:[#allocation24_spill]]  ;;  %p1831_p13 = scmp.ge.s32.totalorder %s1228_s27, 2 }
  0xba   : > { %p919_p3 = pnand %p1831_p13, %p1374_p12 }
  0xbc   : > { %p920_p10 = pneg %p919_p3 }
  0xbe   : > { %s670_s4 = sand.u32 1, %s1829_s22  }
  0xbf   : > { %s671_s29 = scalar_lea.sflag [#allocation4], %s670_s4 }
  0xc0   : > { %1211 = dma.done.wait (%p920_p10), %s671_s29, 512  }
  0xc1   : > { %1213 = vsyncadd (%p920_p10), %s671_s29, 4294966784  ;;  %s1832_s27 = sld [smem:[#allocation26_spill]]  ;;  %s1835_s24 = smov %s1220_s25 }
  0xc2   : > { %s1833_s20 = sld [smem:[#allocation25_spill]] }
  0xc3   : > { %s1834_s26 = sld [smem:[#allocation27_spill]] }
  0xc7   : > { %p29_p0 = scmp.ge.s32.totalorder %s1832_s27, 4  }
  0xc8   : > { %s1836_s25 = smov %s1833_s20 }
  0xc9   :  { %31 = sbr.rel (!%p29_p0) target bundleno = 17 (0x11), region = 144 }
  0xce   :  { %677 = vsyncpa [#allocation3], 1 }
  0xcf   :  { %679 = vsyncpa [#allocation3 + $0x1], 1 }
  0xd0   :  { %680 = vsyncpa [#allocation12], 1 }
  0xd1   :  { %682 = vsyncpa [#allocation12 + $0x1], 1 }
  0xd2   :  { %683 = vsyncpa [#allocation15], 1 }
  0xd3   :  { %685 = vsyncpa [#allocation15 + $0x1], 1 }
  0xd4   :  { %686 = vsyncpa [#allocation4], 1 }
  0xd5   :  { %688 = vsyncpa [#allocation4 + $0x1], 1 }
  0xd6   :  { %689 = vsyncpa [#allocation5], 1 }
  0xd7   :  { %691 = vsyncpa [#allocation5 + $0x1], 1 }
  0xd8   :  { %692 = vsyncpa [#allocation8], 1 }
  0xd9   :  { %693 = vsyncpa [#allocation6], 1 }
  0xda   :  { %695 = vsyncpa [#allocation6 + $0x1], 1 }

</bundles_post_ra>
